<compile_context>
chip_gen: v6e
topology: v6e:2x2x1
jax: 0.10.0
libtpu: 0.0.40
codegen_flags: <defaults>
</compile_context>

<pallas_src>
import numpy as np
import jax
import jax.numpy as jnp
from jax.experimental import pallas as pl
from jax.experimental.pallas import tpu as pltpu

NUM_ANGLES = 12  # GraspNet default number of in-plane rotation angles


# ---------------- parameter construction (plain numpy, deterministic) ----------------

def generate_angles(N=NUM_ANGLES):
    return np.arange(N, dtype=np.float64) * np.pi / N


def generate_angle_vectors(N=NUM_ANGLES):
    angles = generate_angles(N)
    return np.stack([np.cos(2 * angles), np.sin(2 * angles), np.zeros(N)]).T  # (N, 3)


def get_loss_matrix(num_classes):
    vectors = generate_angle_vectors(num_classes)                 # (C, 3)
    cos_matrix = np.dot(vectors, vectors.T)                       # (C, C)
    loss_matrix = (-cos_matrix + 1.0) / 2.0                       # (C, C), in [0, 1]
    return loss_matrix.astype(np.float32)


# ---------------- Pallas kernel + wrapper ----------------

def class_loss(class_pred, class_label, loss_matrix, *, block_b=2048):
    """Mean class loss.  class_pred: (B, C); class_label: (B,) int; loss_matrix: (C, C)."""
    B, C = class_pred.shape

    # Lane-dense layout: classes -> sublanes, batch -> lanes.
    pred_t = class_pred.T                                          # (C, B), input dtype
    labels = class_label.astype(jnp.int32).reshape(1, B)           # (1, B)
    lm_t = loss_matrix.astype(jnp.float32).T                       # (C, C), resident in VMEM

    # Batch tile size: multiple of 128 lanes, no bigger than the (rounded) batch.
    block_b = max(128, (int(block_b) // 128) * 128)
    tb = max(128, min(block_b, pl.cdiv(B, 128) * 128))
    num_tiles = pl.cdiv(B, tb)
    b_pad = num_tiles * tb
    if b_pad != B:
        pred_t = jnp.pad(pred_t, ((0, 0), (0, b_pad - B)))
        labels = jnp.pad(labels, ((0, 0), (0, b_pad - B)))

    def kernel(pred_ref, label_ref, lm_ref, out_ref):
        # In-kernel cast keeps HBM traffic at the input width.
        pred = pred_ref[...].astype(jnp.float32)                   # (C, tb)
        lbl = label_ref[...]                                       # (1, tb) int32
        lm = lm_ref[...]                                           # (C, C) f32 (= loss_matrix^T)

        # Row gather of loss_matrix via one-hot matmul (MXU, no dynamic gather):
        # loss_cols_t[c, b] = loss_matrix[label[b], c]
        row_ids = jax.lax.broadcasted_iota(jnp.int32, pred.shape, 0)   # (C, tb)
        onehot_t = (row_ids == lbl).astype(jnp.float32)                # (C, tb)
        loss_cols_t = jnp.dot(lm, onehot_t,
                              preferred_element_type=jnp.float32)      # (C, tb)

        # Softmax without full normalization: numer / denom, reciprocal on EUP.
        m = jnp.max(pred, axis=0, keepdims=True)                   # (1, tb)
        e = jnp.exp(pred - m)                                      # (C, tb)
        numer = jnp.sum(loss_cols_t * e, axis=0, keepdims=True)    # (1, tb)
        denom = jnp.sum(e, axis=0, keepdims=True)                  # (1, tb)
        per_row = numer * pl.reciprocal(denom, approx=True)        # (1, tb)

        if b_pad != B:  # trace-time constant: only emit the mask when padding exists
            gcol = pl.program_id(0) * tb + jax.lax.broadcasted_iota(
                jnp.int32, (1, tb), 1)
            per_row = jnp.where(gcol < B, per_row, 0.0)

        out_ref[...] = jnp.sum(per_row, axis=1, keepdims=True)     # (1, 1) partial sum

    partials = pl.pallas_call(
        kernel,
        out_shape=jax.ShapeDtypeStruct((num_tiles, 1, 1), jnp.float32),
        grid_spec=pltpu.PrefetchScalarGridSpec(
            num_scalar_prefetch=0,
            grid=(num_tiles,),
            in_specs=[
                pl.BlockSpec((C, tb), lambda i: (0, i)),   # pred^T batch tile
                pl.BlockSpec((1, tb), lambda i: (0, i)),   # label batch tile
                pl.BlockSpec((C, C), lambda i: (0, 0)),    # loss_matrix^T, resident
            ],
            out_specs=pl.BlockSpec((None, 1, 1), lambda i: (i, 0, 0)),
        ),
        compiler_params=pltpu.CompilerParams(
            dimension_semantics=("parallel",),             # shards across TCs on v7x
        ),
    )(pred_t, labels, lm_t)

    # Final mean: divide the accumulated sum by the *true* batch size.
    return jnp.sum(partials) / jnp.float32(B)


# ---------------- reference (pure JAX) ----------------

def class_loss_ref(class_pred, class_label, loss_matrix):
    loss_cols = loss_matrix[class_label]                               # (B, C)
    sm = jax.nn.softmax(class_pred.astype(jnp.float32), axis=1)
    loss_array = jnp.sum(loss_cols * sm, axis=1)
    return jnp.mean(loss_array)


if __name__ == "__main__":
    key = jax.random.PRNGKey(0)
    k_pred, k_lab = jax.random.split(key)

    # Small but non-trivial: 2 batch tiles of 128 lanes + a masked remainder.
    B, C = 200, NUM_ANGLES
    class_pred = jax.random.normal(k_pred, (B, C), dtype=jnp.float32)
    class_label = jax.random.randint(k_lab, (B,), 0, C, dtype=jnp.int32)
    loss_matrix = jnp.asarray(get_loss_matrix(C))

    out = class_loss(class_pred, class_label, loss_matrix, block_b=128)
    out = jax.block_until_ready(out)

    ref = class_loss_ref(class_pred, class_label, loss_matrix)
    # approx reciprocal in the kernel => allow ~1e-3 relative slack.
    assert np.allclose(np.asarray(out), np.asarray(ref), atol=1e-5, rtol=2e-3), (out, ref)

    print("KERNEL_OK")
</pallas_src>

<mosaic_0001>
module attributes {stable_mosaic.version = 11 : i64} {
  func.func @kernel(%arg0: i32, %arg1: memref<12x128xf32, #tpu.memory_space<vmem>>, %arg2: memref<1x128xi32, #tpu.memory_space<vmem>>, %arg3: memref<12x12xf32, #tpu.memory_space<vmem>>, %arg4: memref<1x1x1xf32, #tpu.memory_space<vmem>>) attributes {dimension_semantics = [#tpu.dimension_semantics<parallel>], iteration_bounds = array<i64: 2>, scalar_prefetch = 0 : i64, scratch_operands = 0 : i64, tpu.core_type = #tpu.core_type<tc>, window_params = [{transform_indices = @transform_0, window_bounds = array<i64: 12, 128>}, {transform_indices = @transform_1, window_bounds = array<i64: 1, 128>}, {pipeline_mode = #tpu.pipeline_mode<synchronous>, transform_indices = @transform_2, window_bounds = array<i64: 12, 12>}, {transform_indices = @transform_3, window_bounds = array<i64: 1, 1, 1>}]} {
    %c0 = arith.constant 0 : index
    %c0_0 = arith.constant 0 : index
    %0 = vector.load %arg1[%c0, %c0_0] : memref<12x128xf32, #tpu.memory_space<vmem>>, vector<12x128xf32>
    %c0_1 = arith.constant 0 : index
    %c0_2 = arith.constant 0 : index
    %1 = vector.load %arg2[%c0_1, %c0_2] : memref<1x128xi32, #tpu.memory_space<vmem>>, vector<1x128xi32>
    %c0_3 = arith.constant 0 : index
    %c0_4 = arith.constant 0 : index
    %2 = vector.load %arg3[%c0_3, %c0_4] : memref<12x12xf32, #tpu.memory_space<vmem>>, vector<12x12xf32>
    %3 = tpu.iota {dimensions = array<i32: 0>} : vector<12x128xi32>
    %4 = vector.broadcast %1 : vector<1x128xi32> to vector<12x128xi32>
    %5 = arith.cmpi eq, %3, %4 : vector<12x128xi32>
    %6 = arith.extui %5 : vector<12x128xi1> to vector<12x128xi32>
    %7 = arith.sitofp %6 : vector<12x128xi32> to vector<12x128xf32>
    %cst = arith.constant dense<0.000000e+00> : vector<12x128xf32>
    %8 = tpu.matmul %2, %7, %cst {dimension_numbers = #tpu.dot_dimension_numbers<[1], [0], [0], [1], [0, 0, 1, 1], [], []>} : vector<12x12xf32>, vector<12x128xf32>, vector<12x128xf32> -> vector<12x128xf32>
    %cst_5 = arith.constant dense<0xFF800000> : vector<128xf32>
    %9 = vector.multi_reduction <maximumf>, %0, %cst_5 [0] : vector<12x128xf32> to vector<128xf32>
    %10 = vector.shape_cast %9 : vector<128xf32> to vector<1x128xf32>
    %11 = vector.broadcast %10 : vector<1x128xf32> to vector<12x128xf32>
    %12 = arith.subf %0, %11 : vector<12x128xf32>
    %13 = math.exp %12 : vector<12x128xf32>
    %14 = arith.mulf %8, %13 : vector<12x128xf32>
    %cst_6 = arith.constant dense<0.000000e+00> : vector<128xf32>
    %15 = vector.multi_reduction <add>, %14, %cst_6 [0] : vector<12x128xf32> to vector<128xf32>
    %16 = vector.shape_cast %15 : vector<128xf32> to vector<1x128xf32>
    %cst_7 = arith.constant dense<0.000000e+00> : vector<128xf32>
    %17 = vector.multi_reduction <add>, %13, %cst_7 [0] : vector<12x128xf32> to vector<128xf32>
    %18 = vector.shape_cast %17 : vector<128xf32> to vector<1x128xf32>
    %19 = tpu.reciprocal %18 {approx = true} : vector<1x128xf32> -> vector<1x128xf32>
    %20 = arith.mulf %16, %19 : vector<1x128xf32>
    %c128_i32 = arith.constant 128 : i32
    %21 = arith.muli %arg0, %c128_i32 : i32
    %22 = tpu.iota {dimensions = array<i32: 1>} : vector<1x128xi32>
    %23 = vector.broadcast %21 : i32 to vector<1x128xi32>
    %24 = arith.addi %23, %22 : vector<1x128xi32>
    %c200_i32 = arith.constant 200 : i32
    %25 = vector.broadcast %c200_i32 : i32 to vector<1x128xi32>
    %26 = arith.cmpi slt, %24, %25 : vector<1x128xi32>
    %cst_8 = arith.constant 0.000000e+00 : f32
    %27 = vector.broadcast %cst_8 : f32 to vector<1x128xf32>
    %28 = arith.select %26, %20, %27 : vector<1x128xi1>, vector<1x128xf32>
    %cst_9 = arith.constant dense<0.000000e+00> : vector<1xf32>
    %29 = vector.multi_reduction <add>, %28, %cst_9 [1] : vector<1x128xf32> to vector<1xf32>
    %30 = vector.shape_cast %29 : vector<1xf32> to vector<1x1xf32>
    %c0_10 = arith.constant 0 : index
    %c0_11 = arith.constant 0 : index
    %c0_12 = arith.constant 0 : index
    %31 = vector.load %arg4[%c0_10, %c0_11, %c0_12] : memref<1x1x1xf32, #tpu.memory_space<vmem>>, vector<1x1x1xf32>
    %32 = vector.shape_cast %31 : vector<1x1x1xf32> to vector<1x1xf32>
    %33 = vector.shape_cast %30 : vector<1x1xf32> to vector<1x1x1xf32>
    tpu.vector_store %arg4[%c0_10, %c0_11, %c0_12], %33 {strides = array<i32>} : memref<1x1x1xf32, #tpu.memory_space<vmem>>, vector<1x1x1xf32>,
    return
  }
  func.func @transform_0(%arg0: i32) -> (i32, i32) {
    %c0_i32 = arith.constant 0 : i32
    %c0_i32_0 = arith.constant 0 : i32
    return %c0_i32, %arg0 : i32, i32
  }
  func.func @transform_1(%arg0: i32) -> (i32, i32) {
    %c0_i32 = arith.constant 0 : i32
    %c0_i32_0 = arith.constant 0 : i32
    return %c0_i32, %arg0 : i32, i32
  }
  func.func @transform_2(%arg0: i32) -> (i32, i32) {
    %c0_i32 = arith.constant 0 : i32
    %c0_i32_0 = arith.constant 0 : i32
    %c0_i32_1 = arith.constant 0 : i32
    return %c0_i32, %c0_i32_0 : i32, i32
  }
  func.func @transform_3(%arg0: i32) -> (i32, i32, i32) {
    %c0_i32 = arith.constant 0 : i32
    %c0_i32_0 = arith.constant 0 : i32
    %c0_i32_1 = arith.constant 0 : i32
    return %arg0, %c0_i32, %c0_i32_0 : i32, i32, i32
  }
}

</mosaic_0001>

<bundles_post_ra>
// kernel: tpu_custom_call.1
= control target key start
LH: loop header
LB: loop body
LE: loop exit
PB: predicated region body
PF: predicated region fallthrough
CT: control target
= control target key end

     0   :  { %8 = vsyncpa [#allocation3], 0  ;;  %s907_s0 = inlined_call_operand.hbm [shape: f32[12,256], index: 0, kind: input, shape index: {}]   ;;  %s908_s1 = inlined_call_operand.hbm [shape: s32[1,256], index: 1, kind: input, shape index: {}]   ;;  %s909_s2 = inlined_call_operand.hbm [shape: f32[12,12], index: 2, kind: input, shape index: {}]   ;;  %s910_s3 = inlined_call_operand.vmem [shape: f32[2,1,1], index: 3, kind: output, shape index: {}]  }
   0x1   :  { %10 = vsyncpa [#allocation3 + $0x1], 0 }
   0x2   :  { %11 = vsyncpa [#allocation5], 0 }
   0x3   :  { %13 = vsyncpa [#allocation5 + $0x1], 0  ;;  %s722_s12 = smov 0   ;;  %s724_s13 = smov 0  }
   0x4   :  { %s726_s14 = smov 0   ;;  %s728_s15 = smov 0  }
   0x5 LB: > { %s741_s16 = sadd.s32 4294967295, %s692_s15   ;;  %s744_s17 = sadd.s32 1, %s692_s15   ;;  %s692_s15 = sphi %s728_s15, %s926_s15   ;;  %s688_s14 = sphi %s726_s14, %s925_s14   ;;  %s684_s13 = sphi %s724_s13, %s924_s13   ;;  %s680_s12 = sphi %s722_s12, %s923_s12  }
   0x6   : > { %s23_s18 = ssub.s32 %s692_s15, %s744_s17  ;;  %s26_s19 = sadd.s32 1, %s688_s14 }
   0x7   : > { %p24_p0 = scmp.eq.s32.totalorder %s23_s18, 0  ;;  %p33_p1 = scmp.ne.s32.totalorder %s688_s14, %s684_s13 }
   0x8   : > { %p34_p2 = scmp.eq.s32.totalorder %s692_s15, 0  ;;  %p39_p3 = scmp.ne.s32.totalorder %s684_s13, %s680_s12 }
   0x9   : > { %s754_s20 = scalar_select %p24_p0, %s688_s14, %s26_s19  }
   0xa   : > { %p756_p4 = por %p34_p2, %p33_p1  ;;  %p911_p5 = scmp.eq.s32.totalorder %s741_s16, 0 }
   0xb   : > { %p472_p6 = scmp.ge.s32.totalorder %s692_s15, 1  ;;  %p123_p7 = scmp.lt.s32.totalorder %s692_s15, 3 }
   0xc   : > { %p765_p8 = por %p911_p5, %p39_p3  ;;  %s694_s24 = smov [#allocation6]  }
   0xd   : > { %p769_p9 = pnand %p472_p6, %p123_p7  ;;  %s135_s25 = sshll.u32 %s694_s24, 4  ;;  %s136_s25 = int_to_ptr.vmem [resolvable:$true] %s135_s25 }
   0xe   : > { %s915_s22 = scalar_select %p765_p8, 1, 0 }
   0xf   : > { %s916_s23 = scalar_select %p769_p9, 1, 0 }
  0x10   : > { %p510_p10 = pneg %p769_p9  ;;  %p522_p12 = scmp.lt.s32.totalorder %s692_s15, 2 }
  0x11   : > { %s783_s27 = sand.u32 1, %s688_s14   ;;  %s476_s28 = sshll.u32 %s692_s15, 7 }
  0x12   : > { %p777_p11 = pnand %p510_p10, %p911_p5  ;;  %p788_p13 = pnand %p522_p12, %p756_p4 }
  0x13   : > { %s579_s30 = scalar_lea.vmem %s136_s25, 256  ;;  %p587_p6 = scmp.lt.s32.totalorder %s136_s25, %s136_s25 }
  0x14   : > { %p570_p0 = pneg %p777_p11  ;;  %p580_p1 = scmp.ne.s32.totalorder %s136_s25, %s579_s30 }
  0x15   : > { %p588_p7 = scmp.lt.s32.totalorder %s579_s30, %s579_s30 }
  0x16   : > { %p582_p2 = pnand %p580_p1, %p570_p0 }
  0x17   : > { %p589_p10 = por %p588_p7, %p587_p6 }
  0x18   : > { %p583_p3 = pneg %p582_p2 }
  0x1a   : > { %p590_p5 = pnand %p589_p10, %p583_p3 }
  0x1c   : > { %593 = shalt.err (!%p590_p5)
}
  0x1d   : > { %s695_s4 = smov 128   ;;  %s696_s5 = smov 8  }
  0x1e   : > { %513 = dma.hbm_to_vmem [thread:$0]  (!%p777_p11), %s909_s2, 256, %s136_s25, [#allocation5], %s695_s4, %s695_s4, %s696_s5  }
  0x1f   : > { %s475_s8 = sshll.u32 %s783_s27, 4  ;;  %s806_s11 = scalar_lea.hbm %s907_s0, %s476_s28 }
  0x20   : > { %s153_s12 = scalar_lea.vmem [#allocation2], %s475_s8  ;;  %s169_s19 = sand.u32 1, %s692_s15  }
  0x21   : > { %s159_s18 = sshll.u32 %s153_s12, 4  ;;  %s150_s21 = scalar_lea.sflag [#allocation3], %s783_s27  ;;  %s809_s18 = int_to_ptr.vmem [resolvable:$true] %s159_s18 }
  0x22   : > { %s594_s24 = scalar_lea.hbm %s806_s11, 256  ;;  %p596_p5 = pneg %p788_p13 }
  0x23   : > { %p595_p4 = scmp.ne.s32.totalorder %s806_s11, %s594_s24  ;;  %s599_s28 = scalar_lea.hbm %s907_s0, 512 }
  0x24   : > { %p600_p0 = scmp.lt.s32.totalorder %s806_s11, %s907_s0  ;;  %p601_p1 = scmp.lt.s32.totalorder %s599_s28, %s594_s24 }
  0x25   : > { %p597_p11 = pnand %p596_p5, %p595_p4 }
  0x26   : > { %p602_p2 = por %p601_p1, %p600_p0 }
  0x27   : > { %p598_p12 = pneg %p597_p11 }
  0x29   : > { %p603_p3 = pnand %p602_p2, %p598_p12 }
  0x2b   : > { %606 = shalt.err (!%p603_p3)
}
  0x2c   : > { %s607_s7 = scalar_lea.vmem %s809_s18, 256  ;;  %s697_s8 = smov [#allocation2]  }
  0x2d   : > { %p608_p6 = scmp.ne.s32.totalorder %s809_s18, %s607_s7  ;;  %s612_s9 = sshll.u32 %s697_s8, 4  ;;  %s613_s9 = int_to_ptr.vmem [resolvable:$false] %s612_s9 }
  0x2e   : > { %s614_s10 = scalar_lea.vmem %s613_s9, 512  ;;  %p615_p4 = scmp.lt.s32.totalorder %s809_s18, %s613_s9 }
  0x2f   : > { %p610_p7 = pnand %p608_p6, %p596_p5  ;;  %p616_p11 = scmp.lt.s32.totalorder %s614_s10, %s607_s7 }
  0x31   : > { %p611_p10 = pneg %p610_p7  ;;  %p617_p8 = por %p616_p11, %p615_p4 }
  0x33   : > { %p618_p0 = pnand %p617_p8, %p611_p10 }
  0x35   : > { %621 = shalt.err (!%p618_p0)
}
  0x36   : > { %s698_s12 = smov 256   ;;  %s477_s24 = sshll.u32 %s692_s15, 4 }
  0x37   : > { %517 = dma.hbm_to_vmem [thread:$0]  (!%p788_p13), %s806_s11, 256, %s809_s18, %s150_s21, %s698_s12, %s695_s4, %s696_s5  }
  0x38   : > { %s844_s28 = scalar_lea.hbm %s908_s1, %s477_s24  ;;  %s172_s30 = scalar_lea.vmem [#allocation4], %s783_s27 }
  0x39   : > { %s179_s6 = sshll.u32 %s172_s30, 4  ;;  %s170_s7 = scalar_lea.sflag [#allocation5], %s169_s19  ;;  %s180_s6 = int_to_ptr.vmem [resolvable:$true] %s179_s6 }
  0x3a   : > { %s622_s8 = scalar_lea.hbm %s844_s28, 16  ;;  %s627_s11 = scalar_lea.hbm %s908_s1, 32 }
  0x3b   : > { %p623_p8 = scmp.ne.s32.totalorder %s844_s28, %s622_s8  ;;  %p628_p2 = scmp.lt.s32.totalorder %s844_s28, %s908_s1 }
  0x3c   : > { %p629_p3 = scmp.lt.s32.totalorder %s627_s11, %s622_s8 }
  0x3d   : > { %p625_p12 = pnand %p623_p8, %p596_p5 }
  0x3e   : > { %p630_p6 = por %p629_p3, %p628_p2 }
  0x3f   : > { %p626_p1 = pneg %p625_p12 }
  0x41   : > { %p631_p7 = pnand %p630_p6, %p626_p1 }
  0x43   : > { %634 = shalt.err (!%p631_p7)
}
  0x44   : > { %s635_s15 = scalar_lea.vmem %s180_s6, 16  ;;  %s699_s27 = smov [#allocation4]  }
  0x45   : > { %p636_p10 = scmp.ne.s32.totalorder %s180_s6, %s635_s15  ;;  %s640_s19 = sshll.u32 %s699_s27, 4  ;;  %s641_s19 = int_to_ptr.vmem [resolvable:$false] %s640_s19 }
  0x46   : > { %s642_s9 = scalar_lea.vmem %s641_s19, 32  ;;  %p643_p0 = scmp.lt.s32.totalorder %s180_s6, %s641_s19 }
  0x47   : > { %p638_p4 = pnand %p636_p10, %p596_p5  ;;  %p644_p8 = scmp.lt.s32.totalorder %s642_s9, %s635_s15 }
  0x49   : > { %p639_p11 = pneg %p638_p4  ;;  %p645_p12 = por %p644_p8, %p643_p0 }
  0x4b   : > { %p646_p9 = pnand %p645_p12, %p639_p11 }
  0x4d   : > { %649 = shalt.err (!%p646_p9)
}
  0x4e   : > { %520 = dma.hbm_to_vmem [thread:$0]  (!%p788_p13), %s844_s28, 16, %s180_s6, %s170_s7  }
  0x4f   : > { %p919_p1 = scmp.ne.s32.totalorder %s916_s23, 0 }
  0x50   : > { %s190_s10 = sand.u32 (!%p919_p1), 1, %s684_s13   ;;  %p920_p5 = scmp.ne.s32.totalorder (!%p919_p1), %s915_s22, 0 }
  0x51   : > { %188 = sbr.rel (%p919_p1) target bundleno = 458 (0x1ca), region = 32  ;;  %s479_s12 = sshll.u32 (!%p919_p1), %s190_s10, 4 }
  0x52   : > { %s191_s24 = scalar_lea.sflag (!%p919_p1), [#allocation3], %s190_s10  ;;  %s194_s25 = scalar_lea.vmem (!%p919_p1), [#allocation2], %s479_s12 }
  0x56   : > { %667 = dma.done.wait (%p920_p5), %s191_s24, 256  }
  0x57   : > { %669 = vsyncadd (%p920_p5), %s191_s24, 4294967040  ;;  %s199_s26 = sand.u32 1, %s741_s16   ;;  %s202_s30 = scalar_lea.vmem [#allocation4], %s190_s10 }
  0x58   : > { %s200_s29 = scalar_lea.sflag [#allocation5], %s199_s26 }
  0x59   : > { %671 = dma.done.wait (%p920_p5), %s200_s29, 16  }
  0x5a   : > { %673 = vsyncadd (%p920_p5), %s200_s29, 4294967280  ;;  %p921_p9 = scmp.eq.s32.totalorder %s741_s16, 0 }
  0x5c   : > { %675 = dma.done.wait (%p921_p9), [#allocation5], 256   ;;  %p922_p13 = pmov %p921_p9 }
  0x5d   : > { %v239_v0 = vlaneseq  ;;  %vm252_vm0 = vcmask 97280   ;;  %v481_v3 = vld [vmem:[%s202_s30] ss:$0 sm:$0xff]  ;;  %vm259_vm1 = vcmask 1043456   ;;  %v237_v4 = vld [vmem:[#allocation6] sm:$0xff]  ;;  %v700_v5 = vmov 0.0  }
  0x5e   : > { %677 = vsyncadd (%p922_p13), [#allocation5], 4294967040  ;;  %499 = vmatprep.mubr.msk.f32.mxu0 %vm252_vm0, %v237_v4  ;;  %v238_v7 = vld [vmem:[#allocation6 + $0x8] sm:$0xf]  ;;  %v701_v8 = vmov 1.0   ;;  %v234_v10 = vld [vmem:[%s194_s25] sm:$0xff] }
  0x5f   : > { %v240_v1 = vshrl.u32 %v239_v0, 7  ;;  %v235_v9 = vld [vmem:[%s194_s25 + $0x8] sm:$0xf]  ;;  %s488_s22 = sshll.u32 %s741_s16, 7  ;;  %v374_v41 = vand.u32 127, %v239_v0  ;;  %p231_p2 = scmp.lt.s32.totalorder %s741_s16, 1 }
  0x60   : > { %v338_v11 = vsel %vm259_vm1, %v235_v9, -inf  ;;  %v375_v43 = vstv %s488_s22  ;;  %vm381_vm5 = vcmask 0  }
  0x61   : > { %v241_v2 = vadd.s32 8, %v240_v1  ;;  %vm246_vm3 = vcmp.eq.s32.totalorder %v240_v1, %v481_v3  ;;  %v339_v12 = vmax.f32 %v234_v10, %v338_v11  ;;  %v376_v45 = vadd.s32 %v375_v43, %v374_v41  ;;  %s928_s16 = smov (!%p231_p2, %s741_s16), 1 }
  0x62   : > { %s233_s6 = scalar_lea.vmem %s910_s3, %s928_s16 }
  0x63   : > { %vm247_vm2 = vcmp.eq.s32.totalorder %v241_v2, %v481_v3  ;;  %v340_v13 = vrot.slane %v339_v12, 4  ;;  %vm377_vm4 = vcmp.lt.s32.totalorder %v376_v45, 200 }
  0x64   : > { %v483_v6 = vsel %vm247_vm2, 1.0, %v700_v5 }
  0x65   : > { %495 = vmatprep.subr.msk.mxu0 %vm259_vm1, %v483_v6  ;;  %v341_v14 = vmax.f32 %v339_v12, %v340_v13 }
  0x66   : > { %496 = vmatpush3.msk.msra.mxu0 %vm259_vm1, %v483_v6 }
  0x67   : > { %497 = vmatprep.subr.msk.mxu0 %vm246_vm3, %v701_v8  ;;  %v342_v15 = vrot.slane %v341_v14, 2 }
  0x68   : > { %498 = vmatpush3.msk.msra.mxu0 %vm246_vm3, %v701_v8 }
  0x69   : > { %500 = vmatmul.mubr.msk.f32.vlgmr.msra.gmra.mxu0 %vm252_vm0, %v238_v7  ;;  %v343_v16 = vmax.f32 %v341_v14, %v342_v15 }
  0x6b   : > { %v344_v17 = vrot.slane %v343_v16, 1 }
  0x6d   : > { %v345_v18 = vmax.f32 %v343_v16, %v344_v17 }
  0x6f   : > { %v347_v19 = vsub.f32 %v235_v9, %v345_v18  ;;  %v346_v20 = vsub.f32 %v234_v10, %v345_v18 }
  0x71   : > { %v350_v21 = vmul.f32 1.442695, %v347_v19  ;;  %v348_v22 = vmul.f32 1.442695, %v346_v20 }
  0x73   : > { %562 = vpow2.f32 %v350_v21 }
  0x74   : > { %564 = vpow2.f32 %v348_v22 }
  0x80   : > { %v563_v23 = vpop.eup %562 }
  0x81   : > { %v565_v24 = vpop.eup %564  ;;  %v362_v25 = vsel %vm259_vm1, %v563_v23, 0.0 }
  0x82   : > { %v363_v26 = vadd.f32 %v565_v24, %v362_v25 }
  0x84   : > { %v364_v27 = vrot.slane %v363_v26, 4 }
  0x86   : > { %v365_v28 = vadd.f32 %v364_v27, %v363_v26 }
  0x88   : > { %v366_v29 = vrot.slane %v365_v28, 2 }
  0x8a   : > { %v367_v30 = vadd.f32 %v366_v29, %v365_v28 }
  0x8c   : > { %v368_v31 = vrot.slane %v367_v30, 1 }
  0x8e   : > { %v369_v32 = vadd.f32 %v368_v31, %v367_v30 }
  0x90   : > { %566 = vrcp.f32 %v369_v32 }
  0x9d   : > { %v567_v47 = vpop.eup %566 }
 0x129   : > { %v501_v33 = vpop.f32.mrf.mxu0 }
 0x12a   : > { %v353_v34 = vmul.f32 %v563_v23, %v501_v33 }
 0x12b   : > { %v329_v35 = vpop.f32.mrf.mxu0 }
 0x12c   : > { %v354_v36 = vsel %vm259_vm1, %v353_v34, 0.0  ;;  %v352_v37 = vmul.f32 %v565_v24, %v329_v35 }
 0x12e   : > { %v355_v38 = vadd.f32 %v354_v36, %v352_v37 }
 0x130   : > { %v356_v39 = vrot.slane %v355_v38, 4 }
 0x132   : > { %v357_v40 = vadd.f32 %v356_v39, %v355_v38 }
 0x134   : > { %v358_v42 = vrot.slane %v357_v40, 2 }
 0x136   : > { %v359_v44 = vadd.f32 %v358_v42, %v357_v40 }
 0x138   : > { %v360_v46 = vrot.slane %v359_v44, 1 }
 0x13a   : > { %v361_v48 = vadd.f32 %v360_v46, %v359_v44 }
 0x13c   : > { %v371_v49 = vmul.f32 %v567_v47, %v361_v48 }
 0x13e   : > { %v378_v50 = vsel %vm377_vm4, %v371_v49, 0.0 }
 0x13f   : > { %379 = vadd.xlane.f32.xlu0 %v378_v50 }
 0x1c8   : > { %v380_v51 = vpop.xlane.xlu0 %379 }
 0x1c9   : > { %382 = vst.msk [vmem:[%s233_s6] sm:$0x1] %vm381_vm5, %v380_v51 }
 0x1ca PF: > { %p16_p3 = scmp.ge.s32.totalorder %s744_s17, 4   ;;  %s923_s12 = smov %s684_s13 }
 0x1cb   : > { %s924_s13 = smov %s688_s14  ;;  %s925_s14 = smov %s754_s20 }
 0x1cc   : > { %s926_s15 = smov %s744_s17  ;;  %18 = sbr.rel (!%p16_p3) target bundleno = 5 (0x5), region = 89 }
 0x1d1   :  { %400 = vsyncpa [#allocation3], 1 }
 0x1d2   :  { %402 = vsyncpa [#allocation3 + $0x1], 1 }
 0x1d3   :  { %403 = vsyncpa [#allocation5], 1 }
 0x1d4   :  { %405 = vsyncpa [#allocation5 + $0x1], 1 }

</bundles_post_ra>
